<compile_context>
chip_gen: v7x
topology: tpu7x:2x2x1
jax: 0.10.0
libtpu: 0.0.40
codegen_flags: <defaults>
</compile_context>

<pallas_src>
import functools

import jax
import jax.numpy as jnp
import numpy as np
from jax.experimental import pallas as pl
from jax.experimental.pallas import tpu as pltpu

BN_EPS = 1e-5  # PyTorch BatchNorm2d default


# ----------------------------------------------------------------------------
# Kernel 1: packed theta / phi / g projections (runs once per spatial row).
# ----------------------------------------------------------------------------
def _proj_kernel(x_ref, thw_ref, thb_ref, phw_ref, phb_ref, gw_ref, gb_ref,
                 th_out, ph_out, gx_out):
    # x_ref : (1, ts, C) bf16 ; weights bf16 ; biases f32.
    x = x_ref[0]
    th = jnp.dot(x, thw_ref[...], preferred_element_type=jnp.float32) + thb_ref[...]
    ph = jnp.dot(x, phw_ref[...], preferred_element_type=jnp.float32) + phb_ref[...]
    gx = jnp.dot(x, gw_ref[...], preferred_element_type=jnp.float32) + gb_ref[...]
    th_out[0] = th.astype(jnp.bfloat16)
    ph_out[0] = ph.astype(jnp.bfloat16)
    gx_out[0] = gx.astype(jnp.bfloat16)


# ----------------------------------------------------------------------------
# Kernel 2: flash-style multi-stage attention + fused W/BN/concat/residual.
# ----------------------------------------------------------------------------
def _attn_kernel(th_ref, ph_ref, gx_ref, xq_ref, wblk_ref, wob_ref,
                 out_ref, m_sc, acc_sc, *, G, c1, c2, use_bf16_exp):
    # th_ref  : (1, tq,  G*c1)   bf16  theta of the query rows (scale folded)
    # ph_ref  : (1, tkv, G*c1)   bf16  phi of the kv rows
    # gx_ref  : (1, tkv, G*c2e)  bf16  g of the kv rows, + a per-stage ones col
    # xq_ref  : (1, tq,  C)      bf16  residual rows of x
    # wblk_ref: (G, c2, C)       bf16  per-stage W rows (BN folded, full-width)
    # wob_ref : (1, C)           f32   folded W bias + BN shift
    # scratch : m_sc (G, tq, 1) f32 ; acc_sc (G, tq, c2e) f32
    #           (last acc column = running softmax denominator l)
    c2e = c2 + 1
    kv = pl.program_id(2)
    nkv = pl.num_programs(2)

    @pl.when(kv == 0)
    def _():
        m_sc[...] = jnp.full_like(m_sc, -jnp.inf)
        acc_sc[...] = jnp.zeros_like(acc_sc)

    th = th_ref[0]                                                   # (tq,  G*c1)
    ph = ph_ref[0]                                                   # (tkv, G*c1)
    gx = gx_ref[0]                                                   # (tkv, G*c2e)

    for g in range(G):                     # static unroll over pyramid stages
        s = jax.lax.dot_general(th[:, g * c1:(g + 1) * c1],
                                ph[:, g * c1:(g + 1) * c1],
                                (((1,), (1,)), ((), ())),
                                preferred_element_type=jnp.float32)  # (tq, tkv)
        m_prev = m_sc[g]                                             # (tq, 1) f32
        m_new = jnp.maximum(m_prev, jnp.max(s, axis=-1, keepdims=True))
        alpha = jnp.exp(m_prev - m_new)                              # f32 rescale
        sm = s - m_new
        if use_bf16_exp:
            p = jnp.exp(sm.astype(jnp.bfloat16))        # v6e/v7x: bf16 EUP
        else:
            p = jnp.exp(sm).astype(jnp.bfloat16)        # v5e/older: fp32 EUP
        # p @ [gx_g | 1]: last output column is the softmax row-sum, computed
        # on the MXU instead of an XLU cross-lane reduce.
        pv = jnp.dot(p, gx[:, g * c2e:(g + 1) * c2e],
                     preferred_element_type=jnp.float32)             # (tq, c2e)
        acc_sc[g] = alpha * acc_sc[g] + pv               # whole-slab store
        m_sc[g] = m_new

    @pl.when(kv == nkv - 1)
    def _():
        # normalize, fused per-stage W+BN (full-width rows => lane-dense adds),
        # channel-concat of '+' fusion is implicit in the column placement,
        # residual from the resident x block.
        ctx = xq_ref[0].astype(jnp.float32) + wob_ref[...]           # (tq, C)
        for g in range(G):
            a = acc_sc[g]                                            # (tq, c2e)
            inv = pl.reciprocal(a[:, c2:c2 + 1], approx=True)        # 1 / l
            y = (a[:, :c2] * inv).astype(jnp.bfloat16)               # (tq, c2)
            ctx = ctx + jnp.dot(y, wblk_ref[g],
                                preferred_element_type=jnp.float32)  # (tq, C)
        out_ref[0] = ctx.astype(out_ref.dtype)


# ----------------------------------------------------------------------------
# Tiling / VMEM helpers (generation-aware).
# ----------------------------------------------------------------------------
def _tpu_kind():
    try:
        return jax.devices()[0].device_kind.lower()
    except Exception:  # no device info available
        return ""


def _tile(S, max_tile):
    for t in (256, 128, 64, 32, 16, 8):
        if t <= max_tile and t <= S and S % t == 0:
            return t
    # TODO(synk): pad + mask the spatial dim when S has no multiple-of-8
    # divisor (e.g. 7x7 feature maps); fall back to one full-S tile for now.
    return S


def _vmem_limit(buffer_bytes):
    # Explicit scoped-VMEM limit sized from the actual buffer sum (2x margin
    # for compiler-internal scratch), capped under v7x's 64 MiB physical VMEM.
    return int(min(max(2 * buffer_bytes + (8 << 20), 16 << 20), 48 << 20))


# ----------------------------------------------------------------------------
# Wrapper: weight packing / folding + the two pallas_calls.
# ----------------------------------------------------------------------------
def ms_pyramid_attention_context(feats_nchw, params):
    """feats_nchw: [B, C, H, W] float32.  Returns [B, C, H, W] float32."""
    B, C, H, W = feats_nchw.shape
    S = H * W
    G, c1, Cin = params["theta_w"].shape
    c2 = params["g_w"].shape[1]
    OC = C // G
    c2e = c2 + 1                       # +1 ones-column per stage (row-sum on MXU)
    assert Cin == C and G * OC == C

    kind = _tpu_kind()
    is_old = any(t in kind for t in ("v2", "v3", "v4", "v5"))
    use_bf16_exp = ("tpu" in kind) and not is_old     # bf16 EUP only on v6e/v7x
    max_tile = 128 if is_old else 256                 # v5e: 128x128 MXU, 16MiB scoped

    # NCHW -> [B, S, C] channels-last, bf16 so every MXU matmul is fed bf16.
    x = jnp.transpose(feats_nchw.reshape(B, C, S), (0, 2, 1)).astype(jnp.bfloat16)

    # --- pack projection weights; fold c1**-0.5 into theta -------------------
    scale = jnp.float32(c1) ** -0.5
    thw = (jnp.concatenate([params["theta_w"][g].T for g in range(G)], axis=1)
           * scale).astype(jnp.bfloat16)                              # (C, G*c1)
    thb = params["theta_b"].reshape(1, G * c1) * scale                # f32
    phw = jnp.concatenate([params["phi_w"][g].T for g in range(G)],
                          axis=1).astype(jnp.bfloat16)                # (C, G*c1)
    phb = params["phi_b"].reshape(1, G * c1)                          # f32

    # g weights with a folded ones-column per stage: that column of gx is
    # identically 1, so the softmax denominator comes out of the p@gx matmul.
    gcols, gbcols = [], []
    for g in range(G):
        gcols += [params["g_w"][g].T, jnp.zeros((C, 1), jnp.float32)]
        gbcols += [params["g_b"][g, 0], jnp.ones((1,), jnp.float32)]
    gwe = jnp.concatenate(gcols, axis=1).astype(jnp.bfloat16)         # (C, G*c2e)
    gbe = jnp.concatenate(gbcols).reshape(1, G * c2e)                 # f32

    # --- fold eval-mode BatchNorm into W; per-stage full-width W row blocks --
    gamma, beta, mean, var = (params["bn"][:, i] for i in range(4))
    s_bn = gamma * jax.lax.rsqrt(var + BN_EPS)                        # (G, OC)
    w_fold = jnp.transpose(params["W_w"], (0, 2, 1)) * s_bn[:, None, :]  # (G, c2, OC)
    wblk = jnp.zeros((G, c2, C), jnp.float32)
    for g in range(G):
        wblk = wblk.at[g, :, g * OC:(g + 1) * OC].set(w_fold[g])
    wblk = wblk.astype(jnp.bfloat16)                                  # (G, c2, C)
    wob = ((params["W_b"][:, 0] - mean) * s_bn + beta).reshape(1, C)  # (1, C) f32

    # ---------------- stage 1: projections (computed once per row) ----------
    ts = _tile(S, max_tile)
    ns = S // ts
    proj_bytes = (2 * ts * C * 2
                  + 2 * (2 * C * G * c1 + C * G * c2e) * 2
                  + 2 * (2 * G * c1 + G * c2e) * 4
                  + 2 * (2 * ts * G * c1 + ts * G * c2e) * 2)
    theta, phi, gxe = pl.pallas_call(
        _proj_kernel,
        out_shape=(jax.ShapeDtypeStruct((B, S, G * c1), jnp.bfloat16),
                   jax.ShapeDtypeStruct((B, S, G * c1), jnp.bfloat16),
                   jax.ShapeDtypeStruct((B, S, G * c2e), jnp.bfloat16)),
        grid_spec=pltpu.PrefetchScalarGridSpec(
            num_scalar_prefetch=0,
            grid=(B, ns),
            in_specs=[
                pl.BlockSpec((1, ts, C), lambda b, s: (b, s, 0)),
                pl.BlockSpec((C, G * c1), lambda b, s: (0, 0)),
                pl.BlockSpec((1, G * c1), lambda b, s: (0, 0)),
                pl.BlockSpec((C, G * c1), lambda b, s: (0, 0)),
                pl.BlockSpec((1, G * c1), lambda b, s: (0, 0)),
                pl.BlockSpec((C, G * c2e), lambda b, s: (0, 0)),
                pl.BlockSpec((1, G * c2e), lambda b, s: (0, 0)),
            ],
            out_specs=[
                pl.BlockSpec((1, ts, G * c1), lambda b, s: (b, s, 0)),
                pl.BlockSpec((1, ts, G * c1), lambda b, s: (b, s, 0)),
                pl.BlockSpec((1, ts, G * c2e), lambda b, s: (b, s, 0)),
            ]),
        compiler_params=pltpu.CompilerParams(
            dimension_semantics=("parallel", "parallel"),
            vmem_limit_bytes=_vmem_limit(proj_bytes)),
    )(x, thw, thb, phw, phb, gwe, gbe)

    # ---------------- stage 2: flash attention + fused epilogue -------------
    tq = _tile(S, max_tile)
    tkv = _tile(S, max_tile)
    nq = S // tq
    # v7x has 2 TensorCores: keep at least 2 parallel (b, q) blocks.
    while B * nq < 2 and tq >= 16 and tq % 16 == 0:
        tq //= 2
        nq = S // tq
    nkv = S // tkv

    attn_bytes = (2 * tq * G * c1 * 2            # theta tiles (double-buffered)
                  + 2 * tkv * G * c1 * 2         # phi tiles
                  + 2 * tkv * G * c2e * 2        # g / ones tiles
                  + 2 * tq * C * 2               # residual x tiles
                  + 2 * (G * c2 * C * 2 + C * 4)  # constant W rows + bias
                  + 2 * tq * C * 4               # output tiles
                  + G * tq * 4 + G * tq * c2e * 4)  # scratch m / acc

    kernel = functools.partial(_attn_kernel, G=G, c1=c1, c2=c2,
                               use_bf16_exp=use_bf16_exp)

    out = pl.pallas_call(
        kernel,
        out_shape=jax.ShapeDtypeStruct((B, S, C), jnp.float32),
        grid_spec=pltpu.PrefetchScalarGridSpec(
            num_scalar_prefetch=0,
            grid=(B, nq, nkv),
            in_specs=[
                pl.BlockSpec((1, tq, G * c1), lambda b, q, k: (b, q, 0)),
                pl.BlockSpec((1, tkv, G * c1), lambda b, q, k: (b, k, 0)),
                pl.BlockSpec((1, tkv, G * c2e), lambda b, q, k: (b, k, 0)),
                pl.BlockSpec((1, tq, C), lambda b, q, k: (b, q, 0)),
                # Remaining constant operands are small (the large projection
                # weights now live only in the projection kernel); they could
                # be single-buffered with pipeline_mode=pl.Buffered(1) if the
                # VMEM budget ever gets tight.
                pl.BlockSpec((G, c2, C), lambda b, q, k: (0, 0, 0)),
                pl.BlockSpec((1, C), lambda b, q, k: (0, 0)),
            ],
            out_specs=pl.BlockSpec((1, tq, C), lambda b, q, k: (b, q, 0)),
            scratch_shapes=[
                pltpu.VMEM((G, tq, 1), jnp.float32),      # running max
                pltpu.VMEM((G, tq, c2 + 1), jnp.float32),  # running acc (+ l col)
            ]),
        compiler_params=pltpu.CompilerParams(
            dimension_semantics=("parallel", "parallel", "arbitrary"),
            vmem_limit_bytes=_vmem_limit(attn_bytes)),
    )(theta, phi, gxe, x, wblk, wob)

    # [B, S, C] -> NCHW
    return jnp.transpose(out, (0, 2, 1)).reshape(B, C, H, W)


# ----------------------------------------------------------------------------
# Pure-JAX fp32 reference (semantics of the PyTorch forward) for verification.
# ----------------------------------------------------------------------------
def reference(feats_nchw, params):
    B, C, H, W = feats_nchw.shape
    S = H * W
    G = params["theta_w"].shape[0]
    c1 = params["theta_w"].shape[1]
    x = jnp.transpose(feats_nchw.reshape(B, C, S), (0, 2, 1))   # [B, S, C]
    priors = []
    for g in range(G):
        th = jnp.einsum("bsc,kc->bsk", x, params["theta_w"][g]) + params["theta_b"][g, 0]
        ph = jnp.einsum("bsc,kc->bsk", x, params["phi_w"][g]) + params["phi_b"][g, 0]
        gx = jnp.einsum("bsc,kc->bsk", x, params["g_w"][g]) + params["g_b"][g, 0]
        f = jnp.einsum("bqk,bpk->bqp", th, ph) * (c1 ** -0.5)
        attn = jax.nn.softmax(f, axis=-1)
        y = jnp.einsum("bqp,bpk->bqk", attn, gx)
        wy = jnp.einsum("bsk,ok->bso", y, params["W_w"][g]) + params["W_b"][g, 0]
        gamma, beta, mean, var = params["bn"][g]
        bn = (wy - mean) / jnp.sqrt(var + BN_EPS) * gamma + beta
        priors.append(bn)
    context = jnp.concatenate(priors, axis=-1)                  # [B, S, C]
    bottle = context + x
    return jnp.transpose(bottle, (0, 2, 1)).reshape(B, C, H, W)


# ----------------------------------------------------------------------------
# Deterministic synthetic parameters (not a checkpoint load).
# ----------------------------------------------------------------------------
def make_params(key, C, G, c1, c2):
    OC = C // G
    ks = jax.random.split(key, 10)
    p = {
        "theta_w": 0.2 * jax.random.normal(ks[0], (G, c1, C), jnp.float32),
        "theta_b": 0.1 * jax.random.normal(ks[1], (G, 1, c1), jnp.float32),
        "phi_w":   0.2 * jax.random.normal(ks[2], (G, c1, C), jnp.float32),
        "phi_b":   0.1 * jax.random.normal(ks[3], (G, 1, c1), jnp.float32),
        "g_w":     0.2 * jax.random.normal(ks[4], (G, c2, C), jnp.float32),
        "g_b":     0.1 * jax.random.normal(ks[5], (G, 1, c2), jnp.float32),
        "W_w":     0.2 * jax.random.normal(ks[6], (G, OC, c2), jnp.float32),
        "W_b":     0.1 * jax.random.normal(ks[7], (G, 1, OC), jnp.float32),
    }
    gamma = 1.0 + 0.1 * jax.random.normal(ks[8], (G, OC), jnp.float32)
    beta = 0.1 * jax.random.normal(ks[9], (G, OC), jnp.float32)
    mean = jnp.zeros((G, OC), jnp.float32)
    var = jnp.ones((G, OC), jnp.float32)
    p["bn"] = jnp.stack([gamma, beta, mean, var], axis=1)       # [G, 4, OC]
    return p


if __name__ == "__main__":
    # 4 pyramid stages (sizes=(1,1,1,1)), so in_channels must be divisible by 4.
    B, C, H, W = 2, 16, 8, 8
    G, c1, c2 = 4, 8, 8

    key = jax.random.PRNGKey(0)
    k_feat, k_par = jax.random.split(key)
    feats = jax.random.normal(k_feat, (B, C, H, W), jnp.float32)
    params = make_params(k_par, C, G, c1, c2)

    out = jax.block_until_ready(ms_pyramid_attention_context(feats, params))
    ref = jax.block_until_ready(reference(feats, params))

    # Tolerance loosened for end-to-end bf16 MXU feeds (x, weights, attention),
    # bf16 exp on v6e/v7x, and the approx reciprocal softmax normalization.
    np.testing.assert_allclose(np.asarray(out), np.asarray(ref),
                               rtol=3e-2, atol=3e-2)
    print("KERNEL_OK")
</pallas_src>

<mosaic_0001>
module attributes {stable_mosaic.version = 11 : i64} {
  func.func @_proj_kernel(%arg0: i32, %arg1: i32, %arg2: memref<1x64x16xbf16, #tpu.memory_space<vmem>>, %arg3: memref<16x32xbf16, #tpu.memory_space<vmem>>, %arg4: memref<1x32xf32, #tpu.memory_space<vmem>>, %arg5: memref<16x32xbf16, #tpu.memory_space<vmem>>, %arg6: memref<1x32xf32, #tpu.memory_space<vmem>>, %arg7: memref<16x36xbf16, #tpu.memory_space<vmem>>, %arg8: memref<1x36xf32, #tpu.memory_space<vmem>>, %arg9: memref<1x64x32xbf16, #tpu.memory_space<vmem>>, %arg10: memref<1x64x32xbf16, #tpu.memory_space<vmem>>, %arg11: memref<1x64x36xbf16, #tpu.memory_space<vmem>>) attributes {dimension_semantics = [#tpu.dimension_semantics<parallel>, #tpu.dimension_semantics<parallel>], iteration_bounds = array<i64: 2, 1>, scalar_prefetch = 0 : i64, scratch_operands = 0 : i64, tpu.core_type = #tpu.core_type<tc>, window_params = [{transform_indices = @transform_0, window_bounds = array<i64: 1, 64, 16>}, {pipeline_mode = #tpu.pipeline_mode<synchronous>, transform_indices = @transform_1, window_bounds = array<i64: 16, 32>}, {pipeline_mode = #tpu.pipeline_mode<synchronous>, transform_indices = @transform_2, window_bounds = array<i64: 1, 32>}, {pipeline_mode = #tpu.pipeline_mode<synchronous>, transform_indices = @transform_3, window_bounds = array<i64: 16, 32>}, {pipeline_mode = #tpu.pipeline_mode<synchronous>, transform_indices = @transform_4, window_bounds = array<i64: 1, 32>}, {pipeline_mode = #tpu.pipeline_mode<synchronous>, transform_indices = @transform_5, window_bounds = array<i64: 16, 36>}, {pipeline_mode = #tpu.pipeline_mode<synchronous>, transform_indices = @transform_6, window_bounds = array<i64: 1, 36>}, {transform_indices = @transform_7, window_bounds = array<i64: 1, 64, 32>}, {transform_indices = @transform_8, window_bounds = array<i64: 1, 64, 32>}, {transform_indices = @transform_9, window_bounds = array<i64: 1, 64, 36>}]} {
    %c0 = arith.constant 0 : index
    %c0_0 = arith.constant 0 : index
    %c0_1 = arith.constant 0 : index
    %0 = vector.load %arg2[%c0, %c0_0, %c0_1] : memref<1x64x16xbf16, #tpu.memory_space<vmem>>, vector<1x64x16xbf16>
    %1 = vector.shape_cast %0 : vector<1x64x16xbf16> to vector<64x16xbf16>
    %c0_2 = arith.constant 0 : index
    %c0_3 = arith.constant 0 : index
    %2 = vector.load %arg3[%c0_2, %c0_3] : memref<16x32xbf16, #tpu.memory_space<vmem>>, vector<16x32xbf16>
    %cst = arith.constant dense<0.000000e+00> : vector<64x32xf32>
    %3 = tpu.matmul %1, %2, %cst {dimension_numbers = #tpu.dot_dimension_numbers<[1], [0], [0], [1], [0, 0, 1, 1], [], []>} : vector<64x16xbf16>, vector<16x32xbf16>, vector<64x32xf32> -> vector<64x32xf32>
    %c0_4 = arith.constant 0 : index
    %c0_5 = arith.constant 0 : index
    %4 = vector.load %arg4[%c0_4, %c0_5] : memref<1x32xf32, #tpu.memory_space<vmem>>, vector<1x32xf32>
    %5 = vector.broadcast %4 : vector<1x32xf32> to vector<64x32xf32>
    %6 = arith.addf %3, %5 : vector<64x32xf32>
    %c0_6 = arith.constant 0 : index
    %c0_7 = arith.constant 0 : index
    %7 = vector.load %arg5[%c0_6, %c0_7] : memref<16x32xbf16, #tpu.memory_space<vmem>>, vector<16x32xbf16>
    %cst_8 = arith.constant dense<0.000000e+00> : vector<64x32xf32>
    %8 = tpu.matmul %1, %7, %cst_8 {dimension_numbers = #tpu.dot_dimension_numbers<[1], [0], [0], [1], [0, 0, 1, 1], [], []>} : vector<64x16xbf16>, vector<16x32xbf16>, vector<64x32xf32> -> vector<64x32xf32>
    %c0_9 = arith.constant 0 : index
    %c0_10 = arith.constant 0 : index
    %9 = vector.load %arg6[%c0_9, %c0_10] : memref<1x32xf32, #tpu.memory_space<vmem>>, vector<1x32xf32>
    %10 = vector.broadcast %9 : vector<1x32xf32> to vector<64x32xf32>
    %11 = arith.addf %8, %10 : vector<64x32xf32>
    %c0_11 = arith.constant 0 : index
    %c0_12 = arith.constant 0 : index
    %12 = vector.load %arg7[%c0_11, %c0_12] : memref<16x36xbf16, #tpu.memory_space<vmem>>, vector<16x36xbf16>
    %cst_13 = arith.constant dense<0.000000e+00> : vector<64x36xf32>
    %13 = tpu.matmul %1, %12, %cst_13 {dimension_numbers = #tpu.dot_dimension_numbers<[1], [0], [0], [1], [0, 0, 1, 1], [], []>} : vector<64x16xbf16>, vector<16x36xbf16>, vector<64x36xf32> -> vector<64x36xf32>
    %c0_14 = arith.constant 0 : index
    %c0_15 = arith.constant 0 : index
    %14 = vector.load %arg8[%c0_14, %c0_15] : memref<1x36xf32, #tpu.memory_space<vmem>>, vector<1x36xf32>
    %15 = vector.broadcast %14 : vector<1x36xf32> to vector<64x36xf32>
    %16 = arith.addf %13, %15 : vector<64x36xf32>
    %17 = arith.truncf %6 : vector<64x32xf32> to vector<64x32xbf16>
    %c0_16 = arith.constant 0 : index
    %c0_17 = arith.constant 0 : index
    %c0_18 = arith.constant 0 : index
    %18 = vector.load %arg9[%c0_16, %c0_17, %c0_18] : memref<1x64x32xbf16, #tpu.memory_space<vmem>>, vector<1x64x32xbf16>
    %19 = vector.shape_cast %18 : vector<1x64x32xbf16> to vector<64x32xbf16>
    %20 = vector.shape_cast %17 : vector<64x32xbf16> to vector<1x64x32xbf16>
    tpu.vector_store %arg9[%c0_16, %c0_17, %c0_18], %20 {strides = array<i32>} : memref<1x64x32xbf16, #tpu.memory_space<vmem>>, vector<1x64x32xbf16>,
    %21 = arith.truncf %11 : vector<64x32xf32> to vector<64x32xbf16>
    %c0_19 = arith.constant 0 : index
    %c0_20 = arith.constant 0 : index
    %c0_21 = arith.constant 0 : index
    %22 = vector.load %arg10[%c0_19, %c0_20, %c0_21] : memref<1x64x32xbf16, #tpu.memory_space<vmem>>, vector<1x64x32xbf16>
    %23 = vector.shape_cast %22 : vector<1x64x32xbf16> to vector<64x32xbf16>
    %24 = vector.shape_cast %21 : vector<64x32xbf16> to vector<1x64x32xbf16>
    tpu.vector_store %arg10[%c0_19, %c0_20, %c0_21], %24 {strides = array<i32>} : memref<1x64x32xbf16, #tpu.memory_space<vmem>>, vector<1x64x32xbf16>,
    %25 = arith.truncf %16 : vector<64x36xf32> to vector<64x36xbf16>
    %c0_22 = arith.constant 0 : index
    %c0_23 = arith.constant 0 : index
    %c0_24 = arith.constant 0 : index
    %26 = vector.load %arg11[%c0_22, %c0_23, %c0_24] : memref<1x64x36xbf16, #tpu.memory_space<vmem>>, vector<1x64x36xbf16>
    %27 = vector.shape_cast %26 : vector<1x64x36xbf16> to vector<64x36xbf16>
    %28 = vector.shape_cast %25 : vector<64x36xbf16> to vector<1x64x36xbf16>
    tpu.vector_store %arg11[%c0_22, %c0_23, %c0_24], %28 {strides = array<i32>} : memref<1x64x36xbf16, #tpu.memory_space<vmem>>, vector<1x64x36xbf16>,
    return
  }
  func.func @transform_0(%arg0: i32, %arg1: i32) -> (i32, i32, i32) {
    %c0_i32 = arith.constant 0 : i32
    %c0_i32_0 = arith.constant 0 : i32
    return %arg0, %arg1, %c0_i32 : i32, i32, i32
  }
  func.func @transform_1(%arg0: i32, %arg1: i32) -> (i32, i32) {
    %c0_i32 = arith.constant 0 : i32
    %c0_i32_0 = arith.constant 0 : i32
    %c0_i32_1 = arith.constant 0 : i32
    return %c0_i32, %c0_i32_0 : i32, i32
  }
  func.func @transform_2(%arg0: i32, %arg1: i32) -> (i32, i32) {
    %c0_i32 = arith.constant 0 : i32
    %c0_i32_0 = arith.constant 0 : i32
    %c0_i32_1 = arith.constant 0 : i32
    return %c0_i32, %c0_i32_0 : i32, i32
  }
  func.func @transform_3(%arg0: i32, %arg1: i32) -> (i32, i32) {
    %c0_i32 = arith.constant 0 : i32
    %c0_i32_0 = arith.constant 0 : i32
    %c0_i32_1 = arith.constant 0 : i32
    return %c0_i32, %c0_i32_0 : i32, i32
  }
  func.func @transform_4(%arg0: i32, %arg1: i32) -> (i32, i32) {
    %c0_i32 = arith.constant 0 : i32
    %c0_i32_0 = arith.constant 0 : i32
    %c0_i32_1 = arith.constant 0 : i32
    return %c0_i32, %c0_i32_0 : i32, i32
  }
  func.func @transform_5(%arg0: i32, %arg1: i32) -> (i32, i32) {
    %c0_i32 = arith.constant 0 : i32
    %c0_i32_0 = arith.constant 0 : i32
    %c0_i32_1 = arith.constant 0 : i32
    return %c0_i32, %c0_i32_0 : i32, i32
  }
  func.func @transform_6(%arg0: i32, %arg1: i32) -> (i32, i32) {
    %c0_i32 = arith.constant 0 : i32
    %c0_i32_0 = arith.constant 0 : i32
    %c0_i32_1 = arith.constant 0 : i32
    return %c0_i32, %c0_i32_0 : i32, i32
  }
  func.func @transform_7(%arg0: i32, %arg1: i32) -> (i32, i32, i32) {
    %c0_i32 = arith.constant 0 : i32
    %c0_i32_0 = arith.constant 0 : i32
    return %arg0, %arg1, %c0_i32 : i32, i32, i32
  }
  func.func @transform_8(%arg0: i32, %arg1: i32) -> (i32, i32, i32) {
    %c0_i32 = arith.constant 0 : i32
    %c0_i32_0 = arith.constant 0 : i32
    return %arg0, %arg1, %c0_i32 : i32, i32, i32
  }
  func.func @transform_9(%arg0: i32, %arg1: i32) -> (i32, i32, i32) {
    %c0_i32 = arith.constant 0 : i32
    %c0_i32_0 = arith.constant 0 : i32
    return %arg0, %arg1, %c0_i32 : i32, i32, i32
  }
}

</mosaic_0001>

<bundles_post_ra>
// kernel: tpu_custom_call.1
= control target key start
LH: loop header
LB: loop body
LE: loop exit
PB: predicated region body
PF: predicated region fallthrough
CT: control target
= control target key end

     0   :  { %s1251_s30 = smov 0   ;;  %s1253_s10 = smov 0   ;;  %s1380_s0 = inlined_call_operand.vmem [shape: bf16[2,64,16], index: 0, kind: input, shape index: {}]   ;;  %s1381_s1 = inlined_call_operand.vmem [shape: bf16[16,32], index: 1, kind: input, shape index: {}]   ;;  %s1382_s2 = inlined_call_operand.vmem [shape: f32[1,32], index: 2, kind: input, shape index: {}]   ;;  %s1383_s3 = inlined_call_operand.vmem [shape: bf16[16,32], index: 3, kind: input, shape index: {}]   ;;  %s1384_s4 = inlined_call_operand.vmem [shape: f32[1,32], index: 4, kind: input, shape index: {}]   ;;  %s1385_s5 = inlined_call_operand.vmem [shape: bf16[16,36], index: 5, kind: input, shape index: {}]   ;;  %s1386_s6 = inlined_call_operand.vmem [shape: f32[1,36], index: 6, kind: input, shape index: {}]   ;;  %s1387_s7 = inlined_call_operand.vmem [shape: bf16[2,64,32], index: 7, kind: output, shape index: {0}]   ;;  %s1388_s8 = inlined_call_operand.vmem [shape: bf16[2,64,32], index: 8, kind: output, shape index: {1}]   ;;  %s1389_s9 = inlined_call_operand.vmem [shape: bf16[2,64,36], index: 9, kind: output, shape index: {2}]  }
   0x1   :  { %s1255_s11 = smov 0  }
   0x2 LB: > { %s32_s12 = sadd.s32 1, %s1195_s10  ;;  %p1014_p0 = scmp.ge.s32.totalorder %s1199_s11, 1  ;;  %s1199_s11 = sphi %s1255_s11, %s20_s11   ;;  %s1195_s10 = sphi %s1253_s10, %s1391_s10   ;;  %s1191_s30 = sphi %s1251_s30, %s1390_s30  }
   0x3   : > { %p34_p1 = scmp.ge.s32.totalorder %s32_s12, 2  ;;  %p317_p2 = scmp.lt.s32.totalorder %s1199_s11, 3 }
   0x5   : > { %s1393_s12 = smov (%p34_p1, %s32_s12), 0  ;;  %p318_p3 = pnand %p1014_p0, %p317_p2 }
   0x6   : > { %v1170_v0 = vld [vmem:[%s1381_s1] sm:$0xff] (!%p318_p3)   ;;  %p380_p4 = scmp.lt.s32.totalorder (!%p318_p3), %s1191_s30, 1  ;;  %vm463_vm0 = vcmask (!%p318_p3), 130048   ;;  %vm733_vm1 = vcmask (!%p318_p3), 257024   ;;  %vm814_vm2 = vcmask (!%p318_p3), 289792  }
   0x7   : > { %321 = sbr.rel (%p318_p3) target bundleno = 256 (0x100), region = 48  ;;  %v1173_v1 = vld [vmem:[%s1383_s3] sm:$0xff] (!%p318_p3)   ;;  %1114 = vmatprep.subr.bf16.mxu0 (!%p318_p3), %v1170_v0  ;;  %1144 = vmatprep.subr.bf16.mxu1 (!%p318_p3), %v1170_v0 }
   0x8   : > { %v1174_v2 = vld [vmem:[%s1385_s5] sm:$0xff] (!%p318_p3)   ;;  %1115 = vmatpush3.bf16.msra.mxu0 (!%p318_p3), %v1170_v0  ;;  %1145 = vmatpush3.bf16.msra.mxu1 (!%p318_p3), %v1170_v0 }
   0x9   : > { %1124 = vmatprep.subr.bf16.mxu1 (!%p318_p3), %v1173_v1  ;;  %1134 = vmatprep.subr.bf16.mxu0 (!%p318_p3), %v1174_v2  ;;  %v1023_v7 = vld [vmem:[%s1382_s2] ss:$0 sm:$0xff] (!%p318_p3) }
   0xa   : > { %v1039_v31 = vld [vmem:[%s1386_s6] ss:$0 sm:$0xff] (!%p318_p3) }
   0xb   : > { %v1033_v33 = vld [vmem:[%s1384_s4] ss:$0 sm:$0xff] (!%p318_p3) }
   0xe   : > { %s1395_s30 = smov (!%p380_p4, %s1191_s30), 1 }
   0xf   : > { %s1278_s19 = sshll.u32 %s1395_s30, 5 }
  0x10   : > { %s387_s22 = scalar_lea.vmem %s1380_s0, %s1278_s19  ;;  %s1303_s27 = scalar_lea.vmem %s1387_s7, %s1278_s19 }
  0x11   : > { %v1171_v3 = vld [vmem:[%s387_s22] sm:$0xff]   ;;  %v1172_v4 = vld [vmem:[%s387_s22 + $0x10] sm:$0xff]   ;;  %v1175_v5 = vld [vmem:[%s387_s22 + $0x8] sm:$0xff]   ;;  %s1331_s16 = scalar_lea.vmem %s1389_s9, %s1278_s19  ;;  %s1337_s20 = scalar_lea.vmem %s1388_s8, %s1278_s19 }
  0x12   : > { %1116 = vmatprep.mubr.msk.bf16.mxu0 %vm463_vm0, %v1171_v3  ;;  %1120 = vmatprep.mubr.msk.bf16.mxu1 %vm463_vm0, %v1172_v4  ;;  %v1176_v6 = vld [vmem:[%s387_s22 + $0x18] sm:$0xff]  }
  0x13   : > { %1117 = vmatmul.mubr.msk.bf16.vlgmr.msra.gmra.mrb[0].mxu0 %vm463_vm0, %v1175_v5  ;;  %1121 = vmatmul.mubr.msk.bf16.vlgmr.msra.gmra.mrb[0].mxu1 %vm463_vm0, %v1176_v6 }
  0x14   : > { %1135 = vmatpush3.bf16.msra.mxu0 %v1174_v2  ;;  %1125 = vmatpush3.bf16.msra.mxu1 %v1173_v1 }
  0x15   : > { %1126 = vmatprep.mubr.msk.bf16.mxu1 %vm463_vm0, %v1171_v3  ;;  %1136 = vmatprep.mubr.msk.bf16.mxu0 %vm463_vm0, %v1171_v3 }
  0x1b   : > { %1137 = vmatmul.mubr.msk.bf16.vlgmr.msra.gmra.mrb[4].mxu0 %vm463_vm0, %v1175_v5  ;;  %1127 = vmatmul.mubr.msk.bf16.vlgmr.msra.gmra.mrb[4].mxu1 %vm463_vm0, %v1175_v5 }
  0x1c   : > { %1140 = vmatprep.mubr.msk.bf16.mxu0 %vm463_vm0, %v1172_v4  ;;  %1130 = vmatprep.mubr.msk.bf16.mxu1 %vm463_vm0, %v1172_v4 }
  0x23   : > { %1141 = vmatmul.mubr.msk.bf16.gmra.mrb[8].mxu0 %vm463_vm0, %v1176_v6  ;;  %1131 = vmatmul.mubr.msk.bf16.gmra.mrb[8].mxu1 %vm463_vm0, %v1176_v6 }
  0xe6   : > { %v1118_v8 = vpop.f32.mrb[0].mxu0  ;;  %v1122_v10 = vpop.f32.mrb[0].mxu1 }
  0xe7   : > { %v519_v9 = vadd.f32 %v1118_v8, %v1023_v7  ;;  %v510_v11 = vpop.f32.mrb[1].mxu0  ;;  %v535_v12 = vadd.f32 %v1122_v10, %v1023_v7  ;;  %v526_v14 = vpop.f32.mrb[1].mxu1 }
  0xe8   : > { %v511_v13 = vadd.f32 %v1023_v7, %v510_v11  ;;  %v1119_v15 = vpop.f32.mrb[2].mxu0  ;;  %v527_v17 = vadd.f32 %v1023_v7, %v526_v14  ;;  %v1123_v19 = vpop.f32.mrb[2].mxu1 }
  0xe9   : > { %v1077_v16 = vpack.c.bf16 %v519_v9, %v519_v9  ;;  %v522_v18 = vadd.f32 %v1119_v15, %v1023_v7  ;;  %v513_v20 = vpop.f32.mrb[3].mxu0  ;;  %v1081_v21 = vpack.c.bf16 %v535_v12, %v535_v12  ;;  %v538_v23 = vadd.f32 %v1123_v19, %v1023_v7  ;;  %v529_v25 = vpop.f32.mrb[3].mxu1 }
  0xea   : > { %v1075_v22 = vpack.c.bf16 %v511_v13, %v511_v13  ;;  %v514_v24 = vadd.f32 %v1023_v7, %v513_v20  ;;  %v1079_v26 = vpack.c.bf16 %v527_v17, %v527_v17  ;;  %v530_v28 = vadd.f32 %v1023_v7, %v529_v25 }
  0xeb   : > { %736 = vst.msk [vmem:[%s1303_s27 + $0x8] sm:$0xf] %vm733_vm1, %v1077_v16  ;;  %v1078_v27 = vpack.c.bf16 %v522_v18, %v522_v18  ;;  %740 = vst.msk [vmem:[%s1303_s27 + $0x18] sm:$0xf] %vm733_vm1, %v1081_v21  ;;  %v1082_v29 = vpack.c.bf16 %v538_v23, %v538_v23 }
  0xec   : > { %734 = vst.msk [vmem:[%s1303_s27] sm:$0xf] %vm733_vm1, %v1075_v22  ;;  %v1076_v30 = vpack.c.bf16 %v514_v24, %v514_v24  ;;  %738 = vst.msk [vmem:[%s1303_s27 + $0x10] sm:$0xf] %vm733_vm1, %v1079_v26  ;;  %v1080_v32 = vpack.c.bf16 %v530_v28, %v530_v28 }
  0xed   : > { %737 = vst.msk [vmem:[%s1303_s27 + $0xc] sm:$0xf] %vm733_vm1, %v1078_v27  ;;  %741 = vst.msk [vmem:[%s1303_s27 + $0x1c] sm:$0xf] %vm733_vm1, %v1082_v29 }
  0xee   : > { %735 = vst.msk [vmem:[%s1303_s27 + $0x4] sm:$0xf] %vm733_vm1, %v1076_v30  ;;  %v1138_v34 = vpop.f32.mrb[4].mxu0  ;;  %739 = vst.msk [vmem:[%s1303_s27 + $0x14] sm:$0xf] %vm733_vm1, %v1080_v32  ;;  %v1128_v35 = vpop.f32.mrb[4].mxu1 }
  0xef   : > { %v679_v36 = vadd.f32 %v1138_v34, %v1039_v31  ;;  %v670_v37 = vpop.f32.mrb[5].mxu0  ;;  %v599_v38 = vadd.f32 %v1128_v35, %v1033_v33  ;;  %v590_v39 = vpop.f32.mrb[5].mxu1 }
  0xf0   : > { %v671_v40 = vadd.f32 %v1039_v31, %v670_v37  ;;  %v1139_v41 = vpop.f32.mrb[6].mxu0  ;;  %v591_v43 = vadd.f32 %v1033_v33, %v590_v39  ;;  %v1129_v44 = vpop.f32.mrb[6].mxu1 }
  0xf1   : > { %v1093_v42 = vpack.c.bf16 %v679_v36, %v679_v36  ;;  %v682_v45 = vadd.f32 %v1139_v41, %v1039_v31  ;;  %v673_v46 = vpop.f32.mrb[7].mxu0  ;;  %v1085_v47 = vpack.c.bf16 %v599_v38, %v599_v38  ;;  %v602_v49 = vadd.f32 %v1129_v44, %v1033_v33  ;;  %v593_v50 = vpop.f32.mrb[7].mxu1 }
  0xf2   : > { %v1091_v48 = vpack.c.bf16 %v671_v40, %v671_v40  ;;  %v674_v51 = vadd.f32 %v1039_v31, %v673_v46  ;;  %v1083_v52 = vpack.c.bf16 %v591_v43, %v591_v43  ;;  %v594_v54 = vadd.f32 %v1033_v33, %v593_v50 }
  0xf3   : > { %817 = vst.msk [vmem:[%s1331_s16 + $0x8] sm:$0xf] %vm814_vm2, %v1093_v42  ;;  %v1094_v53 = vpack.c.bf16 %v682_v45, %v682_v45  ;;  %v1086_v55 = vpack.c.bf16 %v602_v49, %v602_v49 }
  0xf4   : > { %776 = vst.msk [vmem:[%s1337_s20 + $0x8] sm:$0xf] %vm733_vm1, %v1085_v47  ;;  %v1092_v56 = vpack.c.bf16 %v674_v51, %v674_v51  ;;  %774 = vst.msk [vmem:[%s1337_s20] sm:$0xf] %vm733_vm1, %v1083_v52  ;;  %v1084_v57 = vpack.c.bf16 %v594_v54, %v594_v54 }
  0xf5   : > { %815 = vst.msk [vmem:[%s1331_s16] sm:$0xf] %vm814_vm2, %v1091_v48  ;;  %818 = vst.msk [vmem:[%s1331_s16 + $0xc] sm:$0xf] %vm814_vm2, %v1094_v53 }
  0xf6   : > { %777 = vst.msk [vmem:[%s1337_s20 + $0xc] sm:$0xf] %vm733_vm1, %v1086_v55  ;;  %v1142_v58 = vpop.f32.mrb[8].mxu0  ;;  %775 = vst.msk [vmem:[%s1337_s20 + $0x4] sm:$0xf] %vm733_vm1, %v1084_v57  ;;  %v1132_v59 = vpop.f32.mrb[8].mxu1 }
  0xf7   : > { %816 = vst.msk [vmem:[%s1331_s16 + $0x4] sm:$0xf] %vm814_vm2, %v1092_v56  ;;  %v695_v60 = vadd.f32 %v1142_v58, %v1039_v31  ;;  %v686_v61 = vpop.f32.mrb[9].mxu0  ;;  %v615_v62 = vadd.f32 %v1132_v59, %v1033_v33  ;;  %v606_v63 = vpop.f32.mrb[9].mxu1 }
  0xf8   : > { %v687_v0 = vadd.f32 %v1039_v31, %v686_v61  ;;  %v1143_v1 = vpop.f32.mrb[10].mxu0  ;;  %v607_v3 = vadd.f32 %v1033_v33, %v606_v63  ;;  %v1133_v4 = vpop.f32.mrb[10].mxu1 }
  0xf9   : > { %v1097_v2 = vpack.c.bf16 %v695_v60, %v695_v60  ;;  %v698_v5 = vadd.f32 %v1143_v1, %v1039_v31  ;;  %v689_v6 = vpop.f32.mrb[11].mxu0  ;;  %v1089_v7 = vpack.c.bf16 %v615_v62, %v615_v62  ;;  %v618_v9 = vadd.f32 %v1133_v4, %v1033_v33  ;;  %v609_v10 = vpop.f32.mrb[11].mxu1 }
  0xfa   : > { %v1095_v8 = vpack.c.bf16 %v687_v0, %v687_v0  ;;  %v690_v11 = vadd.f32 %v1039_v31, %v689_v6  ;;  %v1087_v12 = vpack.c.bf16 %v607_v3, %v607_v3  ;;  %v610_v14 = vadd.f32 %v1033_v33, %v609_v10 }
  0xfb   : > { %821 = vst.msk [vmem:[%s1331_s16 + $0x18] sm:$0xf] %vm814_vm2, %v1097_v2  ;;  %v1098_v13 = vpack.c.bf16 %v698_v5, %v698_v5  ;;  %v1090_v15 = vpack.c.bf16 %v618_v9, %v618_v9 }
  0xfc   : > { %780 = vst.msk [vmem:[%s1337_s20 + $0x18] sm:$0xf] %vm733_vm1, %v1089_v7  ;;  %v1096_v16 = vpack.c.bf16 %v690_v11, %v690_v11  ;;  %778 = vst.msk [vmem:[%s1337_s20 + $0x10] sm:$0xf] %vm733_vm1, %v1087_v12  ;;  %v1088_v17 = vpack.c.bf16 %v610_v14, %v610_v14 }
  0xfd   : > { %819 = vst.msk [vmem:[%s1331_s16 + $0x10] sm:$0xf] %vm814_vm2, %v1095_v8  ;;  %822 = vst.msk [vmem:[%s1331_s16 + $0x1c] sm:$0xf] %vm814_vm2, %v1098_v13 }
  0xfe   : > { %781 = vst.msk [vmem:[%s1337_s20 + $0x1c] sm:$0xf] %vm733_vm1, %v1090_v15  ;;  %779 = vst.msk [vmem:[%s1337_s20 + $0x14] sm:$0xf] %vm733_vm1, %v1088_v17 }
  0xff   : > { %820 = vst.msk [vmem:[%s1331_s16 + $0x14] sm:$0xf] %vm814_vm2, %v1096_v16 }
 0x100 PF: > { %s20_s11 = sadd.s32 1, %s1199_s11   ;;  %s1390_s30 = smov %s1195_s10 }
 0x101   : > { %p17_p5 = scmp.ge.s32.totalorder %s20_s11, 4   ;;  %s1391_s10 = smov %s1393_s12 }
 0x103   :  { %19 = sbr.rel (!%p17_p5) target bundleno = 2 (0x2), region = 102 }

</bundles_post_ra>
